<compile_context>
chip_gen: v5e
topology: v5e:2x2
jax: 0.10.0
libtpu: 0.0.40
codegen_flags: <defaults>
</compile_context>

<pallas_src>
import functools

import jax
import jax.numpy as jnp
from jax.experimental import pallas as pl
from jax.experimental.pallas import tpu as pltpu

PI = 3.141592653589793


def _round_up(x, m):
    return ((x + m - 1) // m) * m


def _pad_axis(a, axis, target):
    pad = target - a.shape[axis]
    if pad == 0:
        return a
    widths = [(0, 0)] * a.ndim
    widths[axis] = (0, pad)
    return jnp.pad(a, widths)


def _score_matmul_kernel(up_ref, ent_t_ref, scores_ref):
    # up_ref    : (TB, 2r)  bf16 query tile  [up_re | up_im]
    # ent_t_ref : (2r, TN)  bf16 pre-transposed entity tile [E_re ; E_im]
    # scores_ref: (TB, TN)  f32
    scores_ref[...] = jnp.dot(up_ref[...], ent_t_ref[...],
                              preferred_element_type=jnp.float32)


def _mobius_queries(lhs, rel, rank, embedding_range):
    """Mobius rotation query construction (mirrors the PyTorch forward).

    Returns (up (B, 2*rank) = [up_re | up_im], reg_r (B, rank)).
    Runs as plain XLA in the wrapper: it is O(B*rank), negligible next to the
    (B, 2r) x (2r, n_ent) scoring matmul, and hoisting it keeps the Pallas
    kernel a pure matmul (per the performance review).
    """
    inv_phase = PI / embedding_range
    re_head, im_head = lhs[:, :rank], lhs[:, rank:2 * rank]
    c = [rel[:, i * rank:(i + 1) * rank] for i in range(8)]
    ra = jnp.cos(c[0] * inv_phase)
    ia = jnp.sin(c[1] * inv_phase)
    rb = jnp.cos(c[2] * inv_phase)
    ib = jnp.sin(c[3] * inv_phase)
    rc = jnp.cos(c[4] * inv_phase)
    ic = jnp.sin(c[5] * inv_phase)
    rd = jnp.cos(c[6] * inv_phase)
    idd = jnp.sin(c[7] * inv_phase)

    re_top = re_head * ra - im_head * ia + rb
    im_top = re_head * ia + im_head * ra + ib
    re_dn = re_head * rc - im_head * ic + rd
    im_dn = re_head * ic + im_head * rc + idd

    dn = jnp.sqrt(re_dn * re_dn + im_dn * im_dn)
    up_re = (re_top * re_dn + im_top * im_dn) / dn
    up_im = (re_top * im_dn - im_top * re_dn) / dn

    reg_r = jnp.sqrt(rb * rb + ib * ib + rd * rd + idd * idd)
    return jnp.concatenate([up_re, up_im], axis=1), reg_r


def mobius_esmrot_forward(x, ent_weight, rel_weight, rank,
                          ent_table_t_bf16=None, tile_n=2048):
    """Forward of MobiusESMRot.

    x              : int32 (B, 3) triples (lhs, rel, rhs)
    ent_weight     : f32 (n_ent, 8*rank)   embeddings[0].weight
    rel_weight     : f32 (n_rel, 8*rank)   embeddings[1].weight
    ent_table_t_bf16 : optional bf16 (2*rank, n_ent) cached pre-transposed
                       entity table [E_re ; E_im]; build it ONCE, not per call.
    Returns (scores (B, n_ent) f32, (reg_h, reg_rel, reg_t) each (B, rank)).
    """
    B = x.shape[0]
    n_ent = ent_weight.shape[0]
    embedding_range = 20.0 / (rank * 8)

    # --- glue: data-dependent row gathers stay in XLA -----------------------
    lhs = ent_weight[x[:, 0]]                  # (B, 8r)
    rel = rel_weight[x[:, 1]]                  # (B, 8r)
    rhs = ent_weight[x[:, 2]]                  # (B, 8r)

    re_h, im_h = lhs[:, :rank], lhs[:, rank:2 * rank]
    re_t, im_t = rhs[:, :rank], rhs[:, rank:2 * rank]
    reg_h = jnp.sqrt(re_h * re_h + im_h * im_h)
    reg_t = jnp.sqrt(re_t * re_t + im_t * im_t)

    # Mobius chain hoisted out of the kernel (review item: no per-tile init,
    # no scratch, no pl.when, enables a fully parallel grid).
    up, reg_r = _mobius_queries(lhs, rel, rank, embedding_range)

    if ent_table_t_bf16 is None:
        # NOTE: at real KGE scale cache this bf16 transposed table once
        # (or store the embedding in this layout); fallback only.
        ent_table_t_bf16 = ent_weight[:, :2 * rank].T.astype(jnp.bfloat16)

    # --- tiling / padding ----------------------------------------------------
    if B <= 256:
        tile_b = _round_up(B, 8)
        B_pad = tile_b
    else:
        tile_b = 256                       # matches v6e/v7x 2x256^2 MXU
        B_pad = _round_up(B, tile_b)

    tile_n = _round_up(min(max(tile_n, 256), _round_up(n_ent, 256)), 256)
    n_ent_pad = _round_up(n_ent, tile_n)
    num_n = n_ent_pad // tile_n
    num_b = B_pad // tile_b

    up_pad = _pad_axis(up, 0, B_pad).astype(jnp.bfloat16)           # (B_pad, 2r)
    ent_t_pad = _pad_axis(ent_table_t_bf16.astype(jnp.bfloat16), 1, n_ent_pad)

    # --- VMEM budget from the actual double-buffered tile footprint ---------
    tile_bytes = (2 * rank * tile_n * 2          # bf16 entity tile
                  + tile_b * 2 * rank * 2        # bf16 query tile
                  + tile_b * tile_n * 4)         # f32 scores tile
    footprint = 2 * tile_bytes + (1 << 20)       # double-buffered + slack
    try:
        phys_vmem = int(pltpu.get_tpu_info().vmem_capacity_bytes)
    except Exception:
        phys_vmem = 64 * 1024 * 1024             # conservative (v7x)
    vmem_limit = int(min(max(2 * footprint, 32 * 1024 * 1024),
                         int(phys_vmem * 0.75)))

    cost = pl.CostEstimate(
        flops=2 * B_pad * (2 * rank) * n_ent_pad,
        transcendentals=0,
        bytes_accessed=(2 * (2 * rank) * n_ent_pad          # bf16 table, once
                        + 2 * (2 * rank) * B_pad * num_n    # bf16 up per n tile
                        + 4 * B_pad * n_ent_pad),           # f32 scores write
    )

    # n_ent axis OUTER, B axis INNER: the entity-table block index depends
    # only on the outer axis, so each table tile is fetched from HBM once and
    # reused for every B tile.
    grid = (num_n, num_b)

    scores_pad = pl.pallas_call(
        _score_matmul_kernel,
        out_shape=jax.ShapeDtypeStruct((B_pad, n_ent_pad), jnp.float32),
        grid_spec=pltpu.PrefetchScalarGridSpec(
            num_scalar_prefetch=0,
            grid=grid,
            in_specs=[
                pl.BlockSpec((tile_b, 2 * rank), lambda n, b: (b, 0)),
                pl.BlockSpec((2 * rank, tile_n), lambda n, b: (0, n)),
            ],
            out_specs=pl.BlockSpec((tile_b, tile_n), lambda n, b: (b, n)),
        ),
        compiler_params=pltpu.CompilerParams(
            # Both axes independent -> megacore (v7x) can shard either one.
            dimension_semantics=("parallel", "parallel"),
            vmem_limit_bytes=vmem_limit,
        ),
        cost_estimate=cost,
    )(up_pad, ent_t_pad)

    scores = scores_pad[:B, :n_ent]
    return scores, (reg_h, reg_r, reg_t)


def _reference_forward(x, ent_weight, rel_weight, rank):
    """Pure-jnp f32 reference mirroring the PyTorch forward exactly."""
    embedding_range = 20.0 / (rank * 8)
    phase_denom = embedding_range / PI
    lhs = ent_weight[x[:, 0]]
    rel = rel_weight[x[:, 1]]
    rhs = ent_weight[x[:, 2]]
    re_h, im_h = lhs[:, :rank], lhs[:, rank:2 * rank]
    ra, ia, rb, ib, rc, ic, rd, idd = [
        rel[:, i * rank:(i + 1) * rank] for i in range(8)]
    re_t, im_t = rhs[:, :rank], rhs[:, rank:2 * rank]
    ra = jnp.cos(ra / phase_denom); ia = jnp.sin(ia / phase_denom)
    rb = jnp.cos(rb / phase_denom); ib = jnp.sin(ib / phase_denom)
    rc = jnp.cos(rc / phase_denom); ic = jnp.sin(ic / phase_denom)
    rd = jnp.cos(rd / phase_denom); idd = jnp.sin(idd / phase_denom)
    re_top = re_h * ra - im_h * ia + rb
    im_top = re_h * ia + im_h * ra + ib
    re_dn = re_h * rc - im_h * ic + rd
    im_dn = re_h * ic + im_h * rc + idd
    dn = jnp.sqrt(re_dn * re_dn + im_dn * im_dn)
    up_re = (re_top * re_dn + im_top * im_dn) / dn
    up_im = (re_top * im_dn - im_top * re_dn) / dn
    e_re = ent_weight[:, :rank]
    e_im = ent_weight[:, rank:2 * rank]
    scores = up_re @ e_re.T + up_im @ e_im.T
    return scores, (jnp.sqrt(re_h ** 2 + im_h ** 2),
                    jnp.sqrt(rb ** 2 + ib ** 2 + rd ** 2 + idd ** 2),
                    jnp.sqrt(re_t ** 2 + im_t ** 2))


if __name__ == "__main__":
    # Small deterministic setup consistent with the module; n_ent chosen so
    # that (with tile_n=256) the kernel runs over multiple n_ent tiles.
    n_ent, n_rel, rank = 384, 64, 16
    init_size = 0.001
    B = 24

    key = jax.random.PRNGKey(0)
    k_ent, k_rel, k_x = jax.random.split(key, 3)

    # nn.Embedding default init ~ N(0, 1), then scaled by init_size.
    ent_weight = jax.random.normal(k_ent, (n_ent, 8 * rank), jnp.float32) * init_size
    rel_weight = jax.random.normal(k_rel, (n_rel, 8 * rank), jnp.float32) * init_size

    lhs_ids = jax.random.randint(k_x, (B,), 0, n_ent)
    rel_ids = jax.random.randint(jax.random.fold_in(k_x, 1), (B,), 0, n_rel)
    rhs_ids = jax.random.randint(jax.random.fold_in(k_x, 2), (B,), 0, n_ent)
    x = jnp.stack([lhs_ids, rel_ids, rhs_ids], axis=1).astype(jnp.int32)

    # Cache the pre-transposed bf16 [E_re ; E_im] table ONCE (not per forward).
    ent_table_t_bf16 = jnp.asarray(ent_weight[:, :2 * rank].T).astype(jnp.bfloat16)

    scores, (reg_h, reg_r, reg_t) = mobius_esmrot_forward(
        x, ent_weight, rel_weight, rank,
        ent_table_t_bf16=ent_table_t_bf16, tile_n=256)
    jax.block_until_ready((scores, reg_h, reg_r, reg_t))

    # --- correctness checks --------------------------------------------------
    ref_scores, (ref_h, ref_r, ref_t) = _reference_forward(
        x, ent_weight, rel_weight, rank)
    assert scores.shape == ref_scores.shape

    # (1) bf16-consistent reference: same bf16 rounding of both matmul
    #     operands as the kernel -> tight tolerance validates the kernel.
    up_f32, _ = _mobius_queries(ent_weight[x[:, 0]], rel_weight[x[:, 1]],
                                rank, 20.0 / (rank * 8))
    up_bf = up_f32.astype(jnp.bfloat16).astype(jnp.float32)
    ent_bf = ent_weight[:, :2 * rank].astype(jnp.bfloat16).astype(jnp.float32)
    ref_scores_bf16 = up_bf @ ent_bf.T
    assert jnp.allclose(scores, ref_scores_bf16, atol=1e-5, rtol=1e-4)

    # (2) f32 PyTorch-equivalent reference with a bf16-appropriate tolerance.
    assert jnp.allclose(scores, ref_scores, atol=1e-3, rtol=5e-2)

    # Regularizers are computed in f32 in the wrapper -> tight tolerance.
    assert jnp.allclose(reg_h, ref_h, atol=1e-6)
    assert jnp.allclose(reg_r, ref_r, atol=1e-6)
    assert jnp.allclose(reg_t, ref_t, atol=1e-6)

    print("KERNEL_OK")
</pallas_src>

<mosaic_0001>
module attributes {stable_mosaic.version = 11 : i64} {
  func.func @_score_matmul_kernel(%arg0: i32, %arg1: i32, %arg2: memref<24x32xbf16, #tpu.memory_space<vmem>>, %arg3: memref<32x256xbf16, #tpu.memory_space<vmem>>, %arg4: memref<24x256xf32, #tpu.memory_space<vmem>>) attributes {dimension_semantics = [#tpu.dimension_semantics<parallel>, #tpu.dimension_semantics<parallel>], iteration_bounds = array<i64: 2, 1>, scalar_prefetch = 0 : i64, scratch_operands = 0 : i64, tpu.core_type = #tpu.core_type<tc>, window_params = [{transform_indices = @transform_0, window_bounds = array<i64: 24, 32>}, {transform_indices = @transform_1, window_bounds = array<i64: 32, 256>}, {transform_indices = @transform_2, window_bounds = array<i64: 24, 256>}]} {
    %c0 = arith.constant 0 : index
    %c0_0 = arith.constant 0 : index
    %0 = vector.load %arg2[%c0, %c0_0] : memref<24x32xbf16, #tpu.memory_space<vmem>>, vector<24x32xbf16>
    %c0_1 = arith.constant 0 : index
    %c0_2 = arith.constant 0 : index
    %1 = vector.load %arg3[%c0_1, %c0_2] : memref<32x256xbf16, #tpu.memory_space<vmem>>, vector<32x256xbf16>
    %cst = arith.constant dense<0.000000e+00> : vector<24x256xf32>
    %2 = tpu.matmul %0, %1, %cst {dimension_numbers = #tpu.dot_dimension_numbers<[1], [0], [0], [1], [0, 0, 1, 1], [], []>} : vector<24x32xbf16>, vector<32x256xbf16>, vector<24x256xf32> -> vector<24x256xf32>
    %c0_3 = arith.constant 0 : index
    %c0_4 = arith.constant 0 : index
    %3 = vector.load %arg4[%c0_3, %c0_4] : memref<24x256xf32, #tpu.memory_space<vmem>>, vector<24x256xf32>
    tpu.vector_store %arg4[%c0_3, %c0_4], %2 {strides = array<i32>} : memref<24x256xf32, #tpu.memory_space<vmem>>, vector<24x256xf32>,
    return
  }
  func.func @transform_0(%arg0: i32, %arg1: i32) -> (i32, i32) {
    %c0_i32 = arith.constant 0 : i32
    %c0_i32_0 = arith.constant 0 : i32
    return %arg1, %c0_i32 : i32, i32
  }
  func.func @transform_1(%arg0: i32, %arg1: i32) -> (i32, i32) {
    %c0_i32 = arith.constant 0 : i32
    %c0_i32_0 = arith.constant 0 : i32
    return %c0_i32, %arg0 : i32, i32
  }
  func.func @transform_2(%arg0: i32, %arg1: i32) -> (i32, i32) {
    %c0_i32 = arith.constant 0 : i32
    return %arg1, %arg0 : i32, i32
  }
}

</mosaic_0001>

<bundles_post_ra>
// kernel: tpu_custom_call.1
= control target key start
LH: loop header
LB: loop body
LE: loop exit
PB: predicated region body
PF: predicated region fallthrough
CT: control target
= control target key end

     0   :  { %7 = vsyncpa [#allocation3], 0  ;;  %s866_s0 = inlined_call_operand.hbm [shape: bf16[24,32], index: 0, kind: input, shape index: {}]   ;;  %s867_s1 = inlined_call_operand.hbm [shape: bf16[32,512], index: 1, kind: input, shape index: {}]   ;;  %s868_s2 = inlined_call_operand.hbm [shape: f32[24,512], index: 2, kind: output, shape index: {}]  }
   0x1   :  { %8 = vsyncpa [#allocation6], 0 }
   0x2   :  { %10 = vsyncpa [#allocation6 + $0x1], 0 }
   0x3   :  { %11 = vsyncpa [#allocation4], 0 }
   0x4   :  { %13 = vsyncpa [#allocation4 + $0x1], 0  ;;  %s713_s9 = smov 0   ;;  %s715_s10 = smov 0  }
   0x5   :  { %s717_s11 = smov 0   ;;  %s719_s12 = smov 0  }
   0x6   :  { %s721_s13 = smov 0   ;;  %s723_s14 = smov 0  }
   0x7 LB: > { %s409_s15 = sadd.s32 4294967295, %s687_s14   ;;  %s410_s16 = sadd.s32 4294967294, %s687_s14   ;;  %s687_s14 = sphi %s723_s14, %s19_s14   ;;  %s683_s13 = sphi %s721_s13, %s880_s13   ;;  %s679_s12 = sphi %s719_s12, %s879_s12   ;;  %s675_s11 = sphi %s717_s11, %s878_s11   ;;  %s671_s10 = sphi %s715_s10, %s877_s10   ;;  %s667_s9 = sphi %s713_s9, %s876_s9  }
   0x8   : > { %p77_p0 = scmp.ne.s32.totalorder %s671_s10, %s667_s9  ;;  %p747_p1 = scmp.eq.s32.totalorder %s409_s15, 0 }
   0x9   : > { %p751_p2 = scmp.eq.s32.totalorder %s409_s15, 1  ;;  %p109_p3 = scmp.eq.s32.totalorder %s410_s16, 1 }
   0xa   : > { %p757_p4 = por %p747_p1, %p77_p0  ;;  %p411_p5 = scmp.ge.s32.totalorder %s687_s14, 1 }
   0xb   : > { %p762_p6 = por %p109_p3, %p77_p0  ;;  %p116_p7 = scmp.lt.s32.totalorder %s687_s14, 3 }
   0xc   : > { %s130_s23 = sshll.u32 %s866_s0, 4  ;;  %s689_s25 = smov [#allocation2]   ;;  %s131_s23 = int_to_ptr.hbm [resolvable:$true] %s130_s23 }
   0xd   : > { %p770_p8 = pnand %p411_p5, %p116_p7  ;;  %s132_s26 = sshll.u32 %s689_s25, 4  ;;  %s133_s26 = int_to_ptr.vmem [resolvable:$true] %s132_s26 }
   0xe   : > { %p413_p11 = scmp.ge.s32.totalorder %s687_s14, 2  ;;  %s690_s27 = smov 64  }
   0xf   : > { %p468_p9 = pneg %p770_p8  ;;  %s691_s28 = smov 4  }
  0x10   : > { %s31_s29 = sadd.s32 1, %s683_s13  ;;  %s64_s30 = sadd.s32 1, %s675_s11 }
  0x11   : > { %p469_p10 = pnand %p468_p9, %p747_p1  ;;  %p33_p12 = scmp.ge.s32.totalorder %s31_s29, 2 }
  0x12   : > { %p71_p13 = scmp.ne.s32.totalorder %s675_s11, %s671_s10  ;;  %p72_p0 = scmp.eq.s32.totalorder %s687_s14, 0 }
  0x13   : > { %471 = dma.hbm_to_vmem [thread:$0]  (!%p469_p10), %s131_s23, 192, %s133_s26, [#allocation3], %s690_s27, %s690_s27, %s691_s28  }
  0x14   : > { %s882_s29 = smov (%p33_p12, %s31_s29), 0  ;;  %p786_p3 = por %p72_p0, %p71_p13 }
  0x15   : > { %p792_p5 = por %p751_p2, %p71_p13  ;;  %s61_s5 = ssub.s32 %s683_s13, %s882_s29 }
  0x16   : > { %p481_p7 = scmp.lt.s32.totalorder %s687_s14, 2  ;;  %p62_p9 = scmp.eq.s32.totalorder %s61_s5, 0 }
  0x17   : > { %s146_s6 = sand.u32 1, %s675_s11   ;;  %s448_s15 = sshll.u32 %s683_s13, 3 }
  0x18   : > { %s414_s7 = sshll.u32 %s146_s6, 5  ;;  %s155_s22 = scalar_lea.hbm %s867_s1, %s448_s15 }
  0x19   : > { %s801_s8 = scalar_select %p62_p9, %s675_s11, %s64_s30  }
  0x1a   : > { %s150_s23 = scalar_lea.vmem [#allocation5], %s414_s7  ;;  %s156_s18 = sshll.u32 %s155_s22, 4  ;;  %s157_s18 = int_to_ptr.hbm [resolvable:$true] %s156_s18 }
  0x1b   : > { %s158_s25 = sshll.u32 %s150_s23, 4  ;;  %p473_p2 = pnand %p481_p7, %p786_p3  ;;  %s159_s25 = int_to_ptr.vmem [resolvable:$true] %s158_s25 }
  0x1c   : > { %s147_s26 = scalar_lea.sflag [#allocation6], %s146_s6  ;;  %s692_s27 = smov 256  }
  0x1d   : > { %s693_s28 = smov 128   ;;  %s694_s5 = smov 8  }
  0x1e   : > { %475 = dma.hbm_to_vmem [thread:$0]  (!%p473_p2), %s157_s18, 512, %s159_s25, %s147_s26, %s692_s27, %s693_s28, %s694_s5  }
  0x1f   : > { %170 = sbr.rel (%p770_p8) target bundleno = 192 (0xc0), region = 28 }
  0x24   : > { %654 = dma.done.wait (%p747_p1), [#allocation3], 192  }
  0x25   : > { %656 = vsyncadd (%p747_p1), [#allocation3], 4294967104  ;;  %s816_s30 = sand.u32 1, %s671_s10  }
  0x26   : > { %s419_s3 = sshll.u32 %s816_s30, 5  ;;  %s178_s6 = scalar_lea.sflag [#allocation6], %s816_s30 }
  0x27   : > { %s181_s7 = scalar_lea.vmem [#allocation5], %s419_s3 }
  0x28   : > { %658 = dma.done.wait (%p757_p4), %s178_s6, 512  }
  0x29   : > { %660 = vsyncadd (%p757_p4), %s178_s6, 4294966784  ;;  %v434_v0 = vld [vmem:[%s181_s7 + $0x10] sm:$0xf]  ;;  %v453_v1 = vld [vmem:[%s181_s7 + $0x14] sm:$0xf0]  ;;  %vm243_vm0 = vcmask 261120  }
  0x2a   : > { %v452_v2 = vld [vmem:[%s181_s7 + $0x14] sm:$0xf]  ;;  %v435_v3 = vor.u32 %v453_v1, %v434_v0  ;;  %v436_v4 = vld [vmem:[%s181_s7 + $0x18] sm:$0xf0]  ;;  %v426_v5 = vld [vmem:[%s181_s7] sm:$0xf] }
  0x2b   : > { %v451_v6 = vld [vmem:[%s181_s7 + $0x4] sm:$0xf0]  ;;  %v439_v7 = vor.u32 %v452_v2, %v436_v4  ;;  %v450_v8 = vld [vmem:[%s181_s7 + $0x4] sm:$0xf]  ;;  %v428_v9 = vld [vmem:[%s181_s7 + $0x8] sm:$0xf0] }
  0x2c   : > { %256 = vmatpush.bf16.msra.mxu0 %v435_v3  ;;  %455 = vmatpush.bf16.msra.mxu2 %v435_v3  ;;  %v427_v10 = vor.u32 %v451_v6, %v426_v5  ;;  %v210_v11 = vld [vmem:[#allocation2 + $0x8] sm:$0xf]  ;;  %v431_v12 = vor.u32 %v450_v8, %v428_v9  ;;  %v449_v14 = vld [vmem:[#allocation2] sm:$0xff]  ;;  %s459_s17 = smul.u32 48, %s816_s30  ;;  %s454_s19 = sshll.u32 %s679_s12, 4 }
  0x2d   : > { %274 = vmatpush.bf16.msra.mxu1 %v439_v7  ;;  %457 = vmatpush.bf16.msra.mxu3 %v439_v7  ;;  %v220_v13 = vunpack.c.l.b16 %v210_v11  ;;  %s307_s21 = scalar_lea.hbm %s868_s2, %s454_s19  ;;  %s293_s12 = scalar_lea.sflag [#allocation4], %s816_s30 }
  0x2e   : > { %s202_s24 = scalar_lea.vmem [#allocation7], %s459_s17  ;;  %s310_s23 = sshll.u32 %s307_s21, 4  ;;  %s311_s23 = int_to_ptr.hbm [resolvable:$true] %s310_s23 }
  0x2f   : > { %v222_v15 = vpack.c.b16 %v220_v13, %v220_v13  ;;  %s308_s22 = sshll.u32 %s202_s24, 4  ;;  %s615_s25 = sshra.s32 %s311_s23, 4  ;;  %s829_s22 = int_to_ptr.vmem [resolvable:$true] %s308_s22  ;;  %s616_s25 = int_to_ptr.hbm [resolvable:$true] %s615_s25 }
  0x30   : > { %257 = vmatpush.bf16.msra.mxu0 %v427_v10  ;;  %456 = vmatpush.bf16.msra.mxu2 %v427_v10  ;;  %s617_s18 = scalar_lea.hbm %s616_s25, 48  ;;  %s621_s28 = scalar_lea.hbm %s868_s2, 96 }
  0x31   : > { %275 = vmatpush.bf16.msra.mxu1 %v431_v12  ;;  %458 = vmatpush.bf16.msra.mxu3 %v431_v12  ;;  %p618_p1 = scmp.ne.s32.totalorder %s616_s25, %s617_s18  ;;  %p622_p10 = scmp.lt.s32.totalorder %s616_s25, %s868_s2 }
  0x32   : > { %p623_p12 = scmp.lt.s32.totalorder %s621_s28, %s617_s18 }
  0x33   : > { %440 = vmatmul.msk.bf16.vlgmr.msra.gmra.mxu0 %vm243_vm0, %v449_v14  ;;  %441 = vmatmul.msk.bf16.vlgmr.msra.gmra.mxu2 %vm243_vm0, %v222_v15  ;;  %p619_p4 = pnand %p618_p1, %p792_p5 }
  0x34   : > { %442 = vmatmul.msk.bf16.vlgmr.msra.gmra.mxu1 %vm243_vm0, %v449_v14  ;;  %443 = vmatmul.msk.bf16.vlgmr.msra.gmra.mxu3 %vm243_vm0, %v222_v15  ;;  %p624_p13 = por %p623_p12, %p622_p10 }
  0x35   : > { %p620_p8 = pneg %p619_p4 }
  0x37   : > { %p625_p0 = pnand %p624_p13, %p620_p8 }
  0xb0   : > { %v259_v16 = vpop.f32.mrf.mxu0 }
  0xb1   : > { %286 = vst [vmem:[%s202_s24] sm:$0xff] %v259_v16  ;;  %v277_v17 = vpop.f32.mrf.mxu1 }
  0xb2   : > { %287 = vst [vmem:[%s202_s24 + $0x8] sm:$0xff] %v277_v17 }
  0xb6   : > { %v264_v18 = vpop.f32.mrf.mxu2 }
  0xb7   : > { %290 = vst [vmem:[%s202_s24 + $0x20] sm:$0xff] %v264_v18  ;;  %v282_v19 = vpop.f32.mrf.mxu3 }
  0xb8   : > { %291 = vst [vmem:[%s202_s24 + $0x28] sm:$0xff] %v282_v19  ;;  %v261_v20 = vpop.f32.mrf.mxu0 }
  0xb9   : > { %288 = vst [vmem:[%s202_s24 + $0x10] sm:$0xff] %v261_v20  ;;  %v279_v21 = vpop.f32.mrf.mxu1 }
  0xba   : > { %289 = vst [vmem:[%s202_s24 + $0x18] sm:$0xff] %v279_v21 }
  0xbb   : > { %628 = shalt.err (!%p625_p0)
}
  0xbc   : > { %s695_s30 = smov 256   ;;  %s696_s6 = smov 512  }
  0xbd   : > { %s697_s7 = smov 16  }
  0xbe   : > { %466 = dma.vmem_to_hbm [thread:$0]  (%p792_p5), %s829_s22, 768, %s311_s23, %s293_s12, %s695_s30, %s696_s6, %s697_s7   ;;  %v266_v22 = vpop.f32.mrf.mxu2 }
  0xbf   : > { %v284_v23 = vpop.f32.mrf.mxu3 }
  0xc0 PF: > { %s325_s17 = sand.u32 1, %s667_s9   ;;  %p477_p3 = pnand %p413_p11, %p762_p6 }
  0xc1   : > { %s326_s19 = scalar_lea.sflag [#allocation4], %s325_s17 }
  0xc2   : > { %p478_p7 = pneg %p477_p3 }
  0xc4   : > { %662 = dma.done.wait (%p478_p7), %s326_s19, 768  }
  0xc5   : > { %664 = vsyncadd (%p478_p7), %s326_s19, 4294966528  ;;  %s19_s14 = sadd.s32 1, %s687_s14   ;;  %s876_s9 = smov %s671_s10 }
  0xc6   : > { %p16_p9 = scmp.ge.s32.totalorder %s19_s14, 4   ;;  %s877_s10 = smov %s675_s11 }
  0xc7   : > { %s878_s11 = smov %s801_s8  ;;  %s879_s12 = smov %s683_s13 }
  0xc8   : > { %s880_s13 = smov %s882_s29  ;;  %18 = sbr.rel (!%p16_p9) target bundleno = 7 (0x7), region = 79 }
  0xcd   :  { %332 = vsyncpa [#allocation3], 1 }
  0xce   :  { %334 = vsyncpa [#allocation3 + $0x1], 1 }
  0xcf   :  { %335 = vsyncpa [#allocation6], 1 }
  0xd0   :  { %337 = vsyncpa [#allocation6 + $0x1], 1 }
  0xd1   :  { %338 = vsyncpa [#allocation4], 1 }
  0xd2   :  { %340 = vsyncpa [#allocation4 + $0x1], 1 }

</bundles_post_ra>
